<compile_context>
chip_gen: v6e
topology: v6e:2x2x1
jax: 0.10.0
libtpu: 0.0.40
codegen_flags: <defaults>
</compile_context>

<pallas_src>
import functools

import jax
import jax.numpy as jnp
from jax.experimental import pallas as pl
from jax.experimental.pallas import tpu as pltpu


def _round_up(v, m):
    return ((v + m - 1) // m) * m


def fasttext_kernel(emb, x_ref, gid_ref, w1m_ref, w1a_ref, b1_ref, w2_ref, b2_ref,
                    out_ref):
    """emb (static): pooling group size E.  x_ref: (TB, Np) flattened input."""
    x = x_ref[...]                                     # (TB, Np) matmul dtype
    n = x.shape[-1]

    # ---- Segmented max over each E-lane group (MaxPool1d(kernel=E)) --------
    # Doubling tree of lane rotations; a step only merges a partner lane when
    # the rolled group-id matches, so group boundaries (and the circular wrap
    # over the lane padding) never leak.  Rolling the group-ids with the same
    # shift makes the construction independent of the roll direction.  After
    # the bidirectional tree every lane holds its group's max.
    y = x.astype(jnp.float32)                          # f32 max tree (v5e-safe)
    gid = gid_ref[...]                                 # (1, Np) int32
    gid_full = jnp.broadcast_to(gid, y.shape)          # (TB, Np) int32
    shift = 1
    while shift < emb:
        for s in (shift, n - shift):                   # the two circular directions
            ry = pltpu.roll(y, s, axis=1)
            rg = jnp.broadcast_to(pltpu.roll(gid, s, axis=1), y.shape)
            y = jnp.where(rg == gid_full, jnp.maximum(y, ry), y)
        shift *= 2

    # ---- mid_dense: both pools folded into K = S*E MXU dots ----------------
    # avg pool: w1a rows already carry 1/E -> dot(x, w1a) sums each E-group in
    #           f32 inside the MXU (= mean pool contribution).
    # max pool: every lane of group s holds max_s and w1m rows carry
    #           w1_max[s]/E -> dot(y, w1m) contributes max_s * w1_max[s].
    h = (jnp.dot(x, w1a_ref[...], preferred_element_type=jnp.float32)
         + jnp.dot(y, w1m_ref[...], preferred_element_type=jnp.float32)
         + b1_ref[...])                                # (TB, Hp) f32 accumulate
    h = jnp.tanh(h)

    # TODO(synk): mid_dropout is inference-mode identity (no RNG mask).

    logits = jnp.dot(h.astype(w2_ref.dtype), w2_ref[...],
                     preferred_element_type=jnp.float32) + b2_ref[...]   # (TB, Lp)

    # Numerically stable softmax over the lane-padded label axis.  Padded label
    # lanes carry a -1e30 f32 bias, so exp() underflows to exactly 0 there.
    m = jnp.max(logits, axis=-1, keepdims=True)
    ex = jnp.exp(logits - m)
    denom = jnp.sum(ex, axis=-1, keepdims=True)
    out_ref[...] = (ex * pl.reciprocal(denom, approx=True)).astype(out_ref.dtype)


def _vmem_capacity_bytes():
    try:
        cap = getattr(pltpu.get_tpu_info(), "vmem_capacity_bytes", None)
        if cap:
            return int(cap)
    except Exception:
        pass
    return 64 << 20          # conservative fallback: v7x has 64 MiB per TensorCore


def _plan_tiling(batch, np_, hp, lp, x_itemsize, w_itemsize):
    """Pick the batch tile from the *physical* VMEM footprint.

    Counts the double-buffered x block, the double-buffered f32 output block and
    the (double-buffered, constant-index) resident weights against roughly half
    of the per-core VMEM capacity.  Returns (block_b, resident_bytes, per_row)."""
    budget = _vmem_capacity_bytes() // 2
    resident = 2 * (np_ * hp * 4              # w1 max half (expanded, f32)
                    + np_ * hp * w_itemsize   # w1 avg half (expanded)
                    + hp * lp * w_itemsize    # w2
                    + 8 * hp * 4              # b1  (sublane-padded)
                    + 8 * lp * 4              # b2
                    + 8 * np_ * 4)            # gid
    per_row = 2 * np_ * x_itemsize + 2 * lp * 4   # x block + f32-ish out block, double-buffered
    avail = max(budget - resident, 1 << 20)
    rows = max(8, min(avail // per_row, 4096))
    rows -= rows % 8

    b8 = _round_up(batch, 8)
    block_b = min(rows, b8)
    # Multi-core parts (v7x megacore): keep >= 2 grid steps so the "parallel"
    # batch axis can actually be sharded across the TensorCores.
    if b8 >= 16:
        block_b = min(block_b, max(8, (b8 // 2) // 8 * 8))
    block_b = max(8, block_b - block_b % 8)
    return block_b, resident, per_row


def fasttext_forward(x, w1, b1, w2, b2, *, block_b=None,
                     matmul_dtype=jnp.bfloat16, out_dtype=jnp.float32):
    """x: (B, S, E); w1: (2S, H) rows ordered [max-half ; avg-half] (transposed
    nn.Linear weight, matching torch.concat([max, avg], -1)); b1: (H,) or (1, H);
    w2: (H, L) transposed nn.Linear weight; b2: (L,) or (1, L)."""
    B, S, E = x.shape
    H = w1.shape[1]
    L = w2.shape[1]
    assert w1.shape == (2 * S, H), "w1 must be (2*seq_len, hidden) = [max ; avg] rows"
    assert w2.shape == (H, L)

    N = S * E
    Np = _round_up(N, 128)                   # lane-dense flattened feature axis
    Hp = _round_up(H, 128)                   # lane-dense hidden axis
    Lp = _round_up(L, 128)                   # lane-dense label axis

    # ---- Fold both pools into expanded (S*E, H) weights ---------------------
    # Row s*E + e of an expanded weight multiplies x[:, s, e].
    w1_max = jnp.asarray(w1, jnp.float32)[:S, :]
    w1_avg = jnp.asarray(w1, jnp.float32)[S:, :]
    w1m_exp = jnp.repeat(w1_max * (1.0 / E), E, axis=0)   # pairs with broadcast group max
    w1a_exp = jnp.repeat(w1_avg * (1.0 / E), E, axis=0)   # dot == mean pool

    def _pad2(a, rows, cols, dtype):
        return jnp.zeros((rows, cols), dtype).at[:a.shape[0], :a.shape[1]].set(
            a.astype(dtype))

    w1m_p = _pad2(w1m_exp, Np, Hp, jnp.float32)           # max path stays f32
    w1a_p = _pad2(w1a_exp, Np, Hp, matmul_dtype)
    w2_p = _pad2(jnp.asarray(w2), Hp, Lp, matmul_dtype)
    b1_p = jnp.zeros((1, Hp), jnp.float32).at[:, :H].set(
        jnp.asarray(b1, jnp.float32).reshape(1, H))
    # Padded label lanes get a -1e30 f32 bias -> softmax assigns them ~0 prob.
    b2_p = jnp.full((1, Lp), -1e30, jnp.float32).at[:, :L].set(
        jnp.asarray(b2, jnp.float32).reshape(1, L))
    # Group id per flattened lane; padded lanes land in groups >= S (never merged,
    # zero weights, zero contribution).
    gid = (jnp.arange(Np, dtype=jnp.int32) // E).reshape(1, Np)

    # ---- Batch tiling / VMEM plan -------------------------------------------
    x_isz = jnp.dtype(matmul_dtype).itemsize
    auto_block, resident, per_row = _plan_tiling(B, Np, Hp, Lp, x_isz, x_isz)
    if block_b is None:
        block_b = auto_block
    block_b = max(8, (int(block_b) // 8) * 8)
    Bp = _round_up(max(B, 8), block_b)
    grid = (Bp // block_b,)

    # ---- Lane-dense, contiguous x slab (free reshape; pad only if needed) ----
    x_flat = x.reshape(B, N).astype(matmul_dtype)
    if (Bp, Np) != (B, N):
        x_flat = jnp.zeros((Bp, Np), matmul_dtype).at[:B, :N].set(x_flat)

    est_vmem = resident + per_row * block_b
    cp_kwargs = dict(dimension_semantics=("parallel",))
    if est_vmem > (12 << 20):
        # Only raise the scoped-VMEM limit beyond the generation default
        # (16 MiB v5e / 32 MiB v6e,v7x) when this kernel actually needs it.
        cp_kwargs["vmem_limit_bytes"] = int(
            min(_vmem_capacity_bytes() * 3 // 4, max(32 << 20, est_vmem * 5 // 4)))

    out = pl.pallas_call(
        functools.partial(fasttext_kernel, E),
        out_shape=jax.ShapeDtypeStruct((Bp, Lp), out_dtype),
        grid=grid,
        in_specs=[
            # x: batch-tiled, lane-dense, double-buffered DMA overlapped with compute.
            pl.BlockSpec((block_b, Np), lambda i: (i, 0)),
            # Constant-index operands: fetched once, VMEM-resident across the grid.
            pl.BlockSpec((1, Np), lambda i: (0, 0)),      # gid
            pl.BlockSpec((Np, Hp), lambda i: (0, 0)),     # w1 max half (f32)
            pl.BlockSpec((Np, Hp), lambda i: (0, 0)),     # w1 avg half
            pl.BlockSpec((1, Hp), lambda i: (0, 0)),      # b1
            pl.BlockSpec((Hp, Lp), lambda i: (0, 0)),     # w2
            pl.BlockSpec((1, Lp), lambda i: (0, 0)),      # b2
        ],
        out_specs=pl.BlockSpec((block_b, Lp), lambda i: (i, 0)),
        compiler_params=pltpu.CompilerParams(**cp_kwargs),
    )(x_flat, gid, w1m_p, w1a_p, b1_p, w2_p, b2_p)
    return out[:B, :L]


def reference_forward(x, w1, b1, w2, b2):
    xm = jnp.max(x, axis=-1)
    xa = jnp.mean(x, axis=-1)
    feat = jnp.concatenate([xm, xa], axis=-1)
    h = jnp.tanh(feat @ w1 + jnp.asarray(b1).reshape(1, -1))
    logits = h @ w2 + jnp.asarray(b2).reshape(1, -1)
    return jax.nn.softmax(logits, axis=-1)


if __name__ == "__main__":
    # Small shapes consistent with the module.
    batch = 16
    seq_len = 8           # S (channels of the 1-D pooling)
    embedding_size = 16   # E (pooling kernel_size)
    hidden_size = 32
    label_size = 2

    key = jax.random.PRNGKey(0)
    kx, kw1, kb1, kw2, kb2 = jax.random.split(key, 5)

    x = jax.random.normal(kx, (batch, seq_len, embedding_size), dtype=jnp.float32)

    # Parameters (deterministic init).  PyTorch Linear stores weight as (out, in);
    # we keep the transposed (in, out) layout for `feat @ W`, with w1 rows ordered
    # [max-half ; avg-half] to match torch.concat([max, avg], dim=-1).
    w1 = jax.random.normal(kw1, (seq_len * 2, hidden_size), dtype=jnp.float32) * 0.1
    b1 = jax.random.normal(kb1, (1, hidden_size), dtype=jnp.float32) * 0.1
    w2 = jax.random.normal(kw2, (hidden_size, label_size), dtype=jnp.float32) * 0.1
    b2 = jax.random.normal(kb2, (1, label_size), dtype=jnp.float32) * 0.1

    ref = reference_forward(x, w1, b1, w2, b2)

    # f32 path (auto batch tile -> 2-step parallel batch grid).
    out_f32 = jax.block_until_ready(
        fasttext_forward(x, w1, b1, w2, b2, matmul_dtype=jnp.float32))
    assert out_f32.shape == (batch, label_size)
    assert jnp.allclose(out_f32, ref, atol=2e-3, rtol=2e-3), "f32 mismatch vs reference"
    assert jnp.allclose(jnp.sum(out_f32, axis=-1), 1.0, atol=5e-3), "softmax rows must sum to ~1"

    # Default bf16 streaming path (v6e / v7x recommendation); f32 accumulation
    # and f32 max tree keep it close to the reference.
    out_bf16 = jax.block_until_ready(fasttext_forward(x, w1, b1, w2, b2))
    assert out_bf16.shape == (batch, label_size)
    assert jnp.allclose(out_bf16, ref, atol=5e-2, rtol=5e-2), "bf16 mismatch vs reference"

    print("KERNEL_OK")
</pallas_src>

<mosaic_0001>
module attributes {stable_mosaic.version = 11 : i64} {
  func.func @fasttext_kernel(%arg0: i32, %arg1: memref<8x128xf32, #tpu.memory_space<vmem>>, %arg2: memref<1x128xi32, #tpu.memory_space<vmem>>, %arg3: memref<128x128xf32, #tpu.memory_space<vmem>>, %arg4: memref<128x128xf32, #tpu.memory_space<vmem>>, %arg5: memref<1x128xf32, #tpu.memory_space<vmem>>, %arg6: memref<128x128xf32, #tpu.memory_space<vmem>>, %arg7: memref<1x128xf32, #tpu.memory_space<vmem>>, %arg8: memref<8x128xf32, #tpu.memory_space<vmem>>) attributes {dimension_semantics = [#tpu.dimension_semantics<parallel>], iteration_bounds = array<i64: 2>, scalar_prefetch = 0 : i64, scratch_operands = 0 : i64, tpu.core_type = #tpu.core_type<tc>, window_params = [{transform_indices = @transform_0, window_bounds = array<i64: 8, 128>}, {pipeline_mode = #tpu.pipeline_mode<synchronous>, transform_indices = @transform_1, window_bounds = array<i64: 1, 128>}, {pipeline_mode = #tpu.pipeline_mode<synchronous>, transform_indices = @transform_2, window_bounds = array<i64: 128, 128>}, {pipeline_mode = #tpu.pipeline_mode<synchronous>, transform_indices = @transform_3, window_bounds = array<i64: 128, 128>}, {pipeline_mode = #tpu.pipeline_mode<synchronous>, transform_indices = @transform_4, window_bounds = array<i64: 1, 128>}, {pipeline_mode = #tpu.pipeline_mode<synchronous>, transform_indices = @transform_5, window_bounds = array<i64: 128, 128>}, {pipeline_mode = #tpu.pipeline_mode<synchronous>, transform_indices = @transform_6, window_bounds = array<i64: 1, 128>}, {transform_indices = @transform_7, window_bounds = array<i64: 8, 128>}]} {
    %c0 = arith.constant 0 : index
    %c0_0 = arith.constant 0 : index
    %0 = vector.load %arg1[%c0, %c0_0] : memref<8x128xf32, #tpu.memory_space<vmem>>, vector<8x128xf32>
    %c0_1 = arith.constant 0 : index
    %c0_2 = arith.constant 0 : index
    %1 = vector.load %arg2[%c0_1, %c0_2] : memref<1x128xi32, #tpu.memory_space<vmem>>, vector<1x128xi32>
    %2 = vector.shape_cast %1 : vector<1x128xi32> to vector<1x128xi32>
    %3 = vector.broadcast %2 : vector<1x128xi32> to vector<8x128xi32>
    %c1_i32 = arith.constant 1 : i32
    %4 = tpu.dynamic_rotate %0 by %c1_i32 dim 1 : vector<8x128xf32>, i32 -> vector<8x128xf32>
    %c1_i32_3 = arith.constant 1 : i32
    %5 = tpu.dynamic_rotate %1 by %c1_i32_3 dim 1 : vector<1x128xi32>, i32 -> vector<1x128xi32>
    %6 = vector.shape_cast %5 : vector<1x128xi32> to vector<1x128xi32>
    %7 = vector.broadcast %6 : vector<1x128xi32> to vector<8x128xi32>
    %8 = arith.cmpi eq, %7, %3 : vector<8x128xi32>
    %9 = arith.maximumf %0, %4 : vector<8x128xf32>
    %10 = arith.select %8, %9, %0 : vector<8x128xi1>, vector<8x128xf32>
    %c127_i32 = arith.constant 127 : i32
    %11 = tpu.dynamic_rotate %10 by %c127_i32 dim 1 : vector<8x128xf32>, i32 -> vector<8x128xf32>
    %c127_i32_4 = arith.constant 127 : i32
    %12 = tpu.dynamic_rotate %1 by %c127_i32_4 dim 1 : vector<1x128xi32>, i32 -> vector<1x128xi32>
    %13 = vector.shape_cast %12 : vector<1x128xi32> to vector<1x128xi32>
    %14 = vector.broadcast %13 : vector<1x128xi32> to vector<8x128xi32>
    %15 = arith.cmpi eq, %14, %3 : vector<8x128xi32>
    %16 = arith.maximumf %10, %11 : vector<8x128xf32>
    %17 = arith.select %15, %16, %10 : vector<8x128xi1>, vector<8x128xf32>
    %c2_i32 = arith.constant 2 : i32
    %18 = tpu.dynamic_rotate %17 by %c2_i32 dim 1 : vector<8x128xf32>, i32 -> vector<8x128xf32>
    %c2_i32_5 = arith.constant 2 : i32
    %19 = tpu.dynamic_rotate %1 by %c2_i32_5 dim 1 : vector<1x128xi32>, i32 -> vector<1x128xi32>
    %20 = vector.shape_cast %19 : vector<1x128xi32> to vector<1x128xi32>
    %21 = vector.broadcast %20 : vector<1x128xi32> to vector<8x128xi32>
    %22 = arith.cmpi eq, %21, %3 : vector<8x128xi32>
    %23 = arith.maximumf %17, %18 : vector<8x128xf32>
    %24 = arith.select %22, %23, %17 : vector<8x128xi1>, vector<8x128xf32>
    %c126_i32 = arith.constant 126 : i32
    %25 = tpu.dynamic_rotate %24 by %c126_i32 dim 1 : vector<8x128xf32>, i32 -> vector<8x128xf32>
    %c126_i32_6 = arith.constant 126 : i32
    %26 = tpu.dynamic_rotate %1 by %c126_i32_6 dim 1 : vector<1x128xi32>, i32 -> vector<1x128xi32>
    %27 = vector.shape_cast %26 : vector<1x128xi32> to vector<1x128xi32>
    %28 = vector.broadcast %27 : vector<1x128xi32> to vector<8x128xi32>
    %29 = arith.cmpi eq, %28, %3 : vector<8x128xi32>
    %30 = arith.maximumf %24, %25 : vector<8x128xf32>
    %31 = arith.select %29, %30, %24 : vector<8x128xi1>, vector<8x128xf32>
    %c4_i32 = arith.constant 4 : i32
    %32 = tpu.dynamic_rotate %31 by %c4_i32 dim 1 : vector<8x128xf32>, i32 -> vector<8x128xf32>
    %c4_i32_7 = arith.constant 4 : i32
    %33 = tpu.dynamic_rotate %1 by %c4_i32_7 dim 1 : vector<1x128xi32>, i32 -> vector<1x128xi32>
    %34 = vector.shape_cast %33 : vector<1x128xi32> to vector<1x128xi32>
    %35 = vector.broadcast %34 : vector<1x128xi32> to vector<8x128xi32>
    %36 = arith.cmpi eq, %35, %3 : vector<8x128xi32>
    %37 = arith.maximumf %31, %32 : vector<8x128xf32>
    %38 = arith.select %36, %37, %31 : vector<8x128xi1>, vector<8x128xf32>
    %c124_i32 = arith.constant 124 : i32
    %39 = tpu.dynamic_rotate %38 by %c124_i32 dim 1 : vector<8x128xf32>, i32 -> vector<8x128xf32>
    %c124_i32_8 = arith.constant 124 : i32
    %40 = tpu.dynamic_rotate %1 by %c124_i32_8 dim 1 : vector<1x128xi32>, i32 -> vector<1x128xi32>
    %41 = vector.shape_cast %40 : vector<1x128xi32> to vector<1x128xi32>
    %42 = vector.broadcast %41 : vector<1x128xi32> to vector<8x128xi32>
    %43 = arith.cmpi eq, %42, %3 : vector<8x128xi32>
    %44 = arith.maximumf %38, %39 : vector<8x128xf32>
    %45 = arith.select %43, %44, %38 : vector<8x128xi1>, vector<8x128xf32>
    %c8_i32 = arith.constant 8 : i32
    %46 = tpu.dynamic_rotate %45 by %c8_i32 dim 1 : vector<8x128xf32>, i32 -> vector<8x128xf32>
    %c8_i32_9 = arith.constant 8 : i32
    %47 = tpu.dynamic_rotate %1 by %c8_i32_9 dim 1 : vector<1x128xi32>, i32 -> vector<1x128xi32>
    %48 = vector.shape_cast %47 : vector<1x128xi32> to vector<1x128xi32>
    %49 = vector.broadcast %48 : vector<1x128xi32> to vector<8x128xi32>
    %50 = arith.cmpi eq, %49, %3 : vector<8x128xi32>
    %51 = arith.maximumf %45, %46 : vector<8x128xf32>
    %52 = arith.select %50, %51, %45 : vector<8x128xi1>, vector<8x128xf32>
    %c120_i32 = arith.constant 120 : i32
    %53 = tpu.dynamic_rotate %52 by %c120_i32 dim 1 : vector<8x128xf32>, i32 -> vector<8x128xf32>
    %c120_i32_10 = arith.constant 120 : i32
    %54 = tpu.dynamic_rotate %1 by %c120_i32_10 dim 1 : vector<1x128xi32>, i32 -> vector<1x128xi32>
    %55 = vector.shape_cast %54 : vector<1x128xi32> to vector<1x128xi32>
    %56 = vector.broadcast %55 : vector<1x128xi32> to vector<8x128xi32>
    %57 = arith.cmpi eq, %56, %3 : vector<8x128xi32>
    %58 = arith.maximumf %52, %53 : vector<8x128xf32>
    %59 = arith.select %57, %58, %52 : vector<8x128xi1>, vector<8x128xf32>
    %c0_11 = arith.constant 0 : index
    %c0_12 = arith.constant 0 : index
    %60 = vector.load %arg4[%c0_11, %c0_12] : memref<128x128xf32, #tpu.memory_space<vmem>>, vector<128x128xf32>
    %cst = arith.constant dense<0.000000e+00> : vector<8x128xf32>
    %61 = tpu.matmul %0, %60, %cst {dimension_numbers = #tpu.dot_dimension_numbers<[1], [0], [0], [1], [0, 0, 1, 1], [], []>} : vector<8x128xf32>, vector<128x128xf32>, vector<8x128xf32> -> vector<8x128xf32>
    %c0_13 = arith.constant 0 : index
    %c0_14 = arith.constant 0 : index
    %62 = vector.load %arg3[%c0_13, %c0_14] : memref<128x128xf32, #tpu.memory_space<vmem>>, vector<128x128xf32>
    %cst_15 = arith.constant dense<0.000000e+00> : vector<8x128xf32>
    %63 = tpu.matmul %59, %62, %cst_15 {dimension_numbers = #tpu.dot_dimension_numbers<[1], [0], [0], [1], [0, 0, 1, 1], [], []>} : vector<8x128xf32>, vector<128x128xf32>, vector<8x128xf32> -> vector<8x128xf32>
    %64 = arith.addf %61, %63 : vector<8x128xf32>
    %c0_16 = arith.constant 0 : index
    %c0_17 = arith.constant 0 : index
    %65 = vector.load %arg5[%c0_16, %c0_17] : memref<1x128xf32, #tpu.memory_space<vmem>>, vector<1x128xf32>
    %66 = vector.broadcast %65 : vector<1x128xf32> to vector<8x128xf32>
    %67 = arith.addf %64, %66 : vector<8x128xf32>
    %68 = math.tanh %67 : vector<8x128xf32>
    %c0_18 = arith.constant 0 : index
    %c0_19 = arith.constant 0 : index
    %69 = vector.load %arg6[%c0_18, %c0_19] : memref<128x128xf32, #tpu.memory_space<vmem>>, vector<128x128xf32>
    %cst_20 = arith.constant dense<0.000000e+00> : vector<8x128xf32>
    %70 = tpu.matmul %68, %69, %cst_20 {dimension_numbers = #tpu.dot_dimension_numbers<[1], [0], [0], [1], [0, 0, 1, 1], [], []>} : vector<8x128xf32>, vector<128x128xf32>, vector<8x128xf32> -> vector<8x128xf32>
    %c0_21 = arith.constant 0 : index
    %c0_22 = arith.constant 0 : index
    %71 = vector.load %arg7[%c0_21, %c0_22] : memref<1x128xf32, #tpu.memory_space<vmem>>, vector<1x128xf32>
    %72 = vector.broadcast %71 : vector<1x128xf32> to vector<8x128xf32>
    %73 = arith.addf %70, %72 : vector<8x128xf32>
    %cst_23 = arith.constant dense<0xFF800000> : vector<8xf32>
    %74 = vector.multi_reduction <maximumf>, %73, %cst_23 [1] : vector<8x128xf32> to vector<8xf32>
    %75 = vector.shape_cast %74 : vector<8xf32> to vector<8x1xf32>
    %76 = vector.broadcast %75 : vector<8x1xf32> to vector<8x128xf32>
    %77 = arith.subf %73, %76 : vector<8x128xf32>
    %78 = math.exp %77 : vector<8x128xf32>
    %cst_24 = arith.constant dense<0.000000e+00> : vector<8xf32>
    %79 = vector.multi_reduction <add>, %78, %cst_24 [1] : vector<8x128xf32> to vector<8xf32>
    %80 = vector.shape_cast %79 : vector<8xf32> to vector<8x1xf32>
    %81 = tpu.reciprocal %80 {approx = true} : vector<8x1xf32> -> vector<8x1xf32>
    %82 = vector.broadcast %81 : vector<8x1xf32> to vector<8x128xf32>
    %83 = arith.mulf %78, %82 : vector<8x128xf32>
    %c0_25 = arith.constant 0 : index
    %c0_26 = arith.constant 0 : index
    %84 = vector.load %arg8[%c0_25, %c0_26] : memref<8x128xf32, #tpu.memory_space<vmem>>, vector<8x128xf32>
    tpu.vector_store %arg8[%c0_25, %c0_26], %83 {strides = array<i32>} : memref<8x128xf32, #tpu.memory_space<vmem>>, vector<8x128xf32>,
    return
  }
  func.func @transform_0(%arg0: i32) -> (i32, i32) {
    %c0_i32 = arith.constant 0 : i32
    %c0_i32_0 = arith.constant 0 : i32
    return %arg0, %c0_i32 : i32, i32
  }
  func.func @transform_1(%arg0: i32) -> (i32, i32) {
    %c0_i32 = arith.constant 0 : i32
    %c0_i32_0 = arith.constant 0 : i32
    %c0_i32_1 = arith.constant 0 : i32
    return %c0_i32, %c0_i32_0 : i32, i32
  }
  func.func @transform_2(%arg0: i32) -> (i32, i32) {
    %c0_i32 = arith.constant 0 : i32
    %c0_i32_0 = arith.constant 0 : i32
    %c0_i32_1 = arith.constant 0 : i32
    return %c0_i32, %c0_i32_0 : i32, i32
  }
  func.func @transform_3(%arg0: i32) -> (i32, i32) {
    %c0_i32 = arith.constant 0 : i32
    %c0_i32_0 = arith.constant 0 : i32
    %c0_i32_1 = arith.constant 0 : i32
    return %c0_i32, %c0_i32_0 : i32, i32
  }
  func.func @transform_4(%arg0: i32) -> (i32, i32) {
    %c0_i32 = arith.constant 0 : i32
    %c0_i32_0 = arith.constant 0 : i32
    %c0_i32_1 = arith.constant 0 : i32
    return %c0_i32, %c0_i32_0 : i32, i32
  }
  func.func @transform_5(%arg0: i32) -> (i32, i32) {
    %c0_i32 = arith.constant 0 : i32
    %c0_i32_0 = arith.constant 0 : i32
    %c0_i32_1 = arith.constant 0 : i32
    return %c0_i32, %c0_i32_0 : i32, i32
  }
  func.func @transform_6(%arg0: i32) -> (i32, i32) {
    %c0_i32 = arith.constant 0 : i32
    %c0_i32_0 = arith.constant 0 : i32
    %c0_i32_1 = arith.constant 0 : i32
    return %c0_i32, %c0_i32_0 : i32, i32
  }
  func.func @transform_7(%arg0: i32) -> (i32, i32) {
    %c0_i32 = arith.constant 0 : i32
    %c0_i32_0 = arith.constant 0 : i32
    return %arg0, %c0_i32 : i32, i32
  }
}

</mosaic_0001>

<bundles_post_ra>
// kernel: tpu_custom_call.1
= control target key start
LH: loop header
LB: loop body
LE: loop exit
PB: predicated region body
PF: predicated region fallthrough
CT: control target
= control target key end

     0   :  { %s1617_s0 = inlined_call_operand.hbm [shape: f32[16,128], index: 0, kind: input, shape index: {}]   ;;  %s1618_s1 = inlined_call_operand.vmem [shape: s32[1,128], index: 1, kind: input, shape index: {}]   ;;  %s1619_s2 = inlined_call_operand.hbm [shape: f32[128,128], index: 2, kind: input, shape index: {}]   ;;  %s1620_s3 = inlined_call_operand.hbm [shape: f32[128,128], index: 3, kind: input, shape index: {}]   ;;  %s1621_s4 = inlined_call_operand.vmem [shape: f32[1,128], index: 4, kind: input, shape index: {}]   ;;  %s1622_s5 = inlined_call_operand.hbm [shape: f32[128,128], index: 5, kind: input, shape index: {}]   ;;  %s1623_s6 = inlined_call_operand.vmem [shape: f32[1,128], index: 6, kind: input, shape index: {}]   ;;  %s1624_s7 = inlined_call_operand.hbm [shape: f32[16,128], index: 7, kind: output, shape index: {}]  }
   0x1   :  { %1629 = sst [smem:[#allocation15_spill]] %s1619_s2 }
   0x2   :  { %1630 = sst [smem:[#allocation16_spill]] %s1620_s3 }
   0x3   :  { %12 = vsyncpa [#allocation3], 0 }
   0x4   :  { %14 = vsyncpa [#allocation3 + $0x1], 0 }
   0x5   :  { %15 = vsyncpa [#allocation6], 0 }
   0x6   :  { %16 = vsyncpa [#allocation9], 0 }
   0x7   :  { %17 = vsyncpa [#allocation4], 0 }
   0x8   :  { %19 = vsyncpa [#allocation4 + $0x1], 0  ;;  %s1337_s24 = smov 0   ;;  %s1339_s25 = smov 0  }
   0x9   :  { %s1341_s26 = smov 0   ;;  %s1343_s27 = smov 0  }
   0xa LB: > { %s1358_s28 = sadd.s32 4294967295, %s1278_s27   ;;  %s829_s29 = sadd.s32 4294967294, %s1278_s27   ;;  %s1278_s27 = sphi %s1343_s27, %s1652_s27   ;;  %s1274_s26 = sphi %s1341_s26, %s1651_s26   ;;  %s1270_s25 = sphi %s1339_s25, %s1650_s25   ;;  %s1266_s24 = sphi %s1337_s24, %s1649_s24  }
   0xb   : > { %p45_p0 = scmp.ne.s32.totalorder %s1270_s25, %s1266_s24  ;;  %p1625_p1 = scmp.eq.s32.totalorder %s1358_s28, 0 }
   0xc   : > { %p201_p3 = scmp.eq.s32.totalorder %s829_s29, 1  ;;  %p830_p5 = scmp.ge.s32.totalorder %s1278_s27, 1 }
   0xd   : > { %p1367_p4 = por %p1625_p1, %p45_p0  ;;  %p208_p7 = scmp.lt.s32.totalorder %s1278_s27, 3 }
   0xe   : > { %p1372_p6 = por %p201_p3, %p45_p0  ;;  %s1280_s10 = smov [#allocation5]  }
   0xf   : > { %s1631_s30 = scalar_select %p1367_p4, 1, 0 }
  0x10   : > { %s1632_s8 = scalar_select %p1372_p6, 1, 0 }
  0x11   : > { %p1377_p8 = pnand %p830_p5, %p208_p7  ;;  %s223_s11 = sshll.u32 %s1280_s10, 4  ;;  %s224_s11 = int_to_ptr.vmem [resolvable:$true] %s223_s11 }
  0x12   : > { %s1281_s13 = smov [#allocation7]   ;;  %s1282_s15 = smov [#allocation8]  }
  0x13   : > { %s1633_s9 = scalar_select %p1377_p8, 1, 0 }
  0x14   : > { %p1021_p9 = pneg %p1377_p8  ;;  %s236_s14 = sshll.u32 %s1281_s13, 4  ;;  %s237_s14 = int_to_ptr.vmem [resolvable:$true] %s236_s14 }
  0x15   : > { %s252_s16 = sshll.u32 %s1282_s15, 4  ;;  %s1111_s17 = scalar_lea.vmem %s224_s11, 2048  ;;  %s253_s16 = int_to_ptr.vmem [resolvable:$true] %s252_s16 }
  0x16   : > { %p1386_p11 = pnand %p1021_p9, %p1625_p1  ;;  %p1112_p13 = scmp.ne.s32.totalorder %s224_s11, %s1111_s17 }
  0x17   : > { %p1119_p5 = scmp.lt.s32.totalorder %s224_s11, %s224_s11  ;;  %p1120_p7 = scmp.lt.s32.totalorder %s1111_s17, %s1111_s17 }
  0x18   : > { %p1102_p12 = pneg %p1386_p11 }
  0x19   : > { %p1121_p9 = por %p1120_p7, %p1119_p5 }
  0x1a   : > { %p1114_p0 = pnand %p1112_p13, %p1102_p12 }
  0x1c   : > { %p1115_p3 = pneg %p1114_p0 }
  0x1e   : > { %p1122_p10 = pnand %p1121_p9, %p1115_p3 }
  0x20   : > { %1125 = shalt.err (!%p1122_p10)
}
  0x21   : > { %s1283_s18 = smov 128   ;;  %s1284_s19 = smov 8  }
  0x22   : > { %s1635_s2 = sld [smem:[#allocation15_spill]]  ;;  %s1137_s22 = scalar_lea.vmem %s237_s14, 2048 }
  0x23   : > { %p1138_p1 = scmp.ne.s32.totalorder %s237_s14, %s1137_s22  ;;  %p1145_p2 = scmp.lt.s32.totalorder %s237_s14, %s237_s14 }
  0x24   : > { %p1146_p6 = scmp.lt.s32.totalorder %s1137_s22, %s1137_s22 }
  0x25   : > { %p1140_p13 = pnand %p1138_p1, %p1102_p12 }
  0x26   : > { %p1147_p5 = por %p1146_p6, %p1145_p2 }
  0x27   : > { %p1141_p0 = pneg %p1140_p13 }
  0x28   : > { %1024 = dma.hbm_to_vmem [thread:$0]  (!%p1386_p11), %s1635_s2, 2048, %s224_s11, [#allocation6], %s1283_s18, %s1283_s18, %s1284_s19  }
  0x29   : > { %p1148_p3 = pnand %p1147_p5, %p1141_p0 }
  0x2b   : > { %1151 = shalt.err (!%p1148_p3)
}
  0x2c   : > { %s1636_s3 = sld [smem:[#allocation16_spill]]  ;;  %s1163_s10 = scalar_lea.vmem %s253_s16, 2048 }
  0x2d   : > { %p1164_p10 = scmp.ne.s32.totalorder %s253_s16, %s1163_s10  ;;  %p1171_p9 = scmp.lt.s32.totalorder %s253_s16, %s253_s16 }
  0x2e   : > { %p1172_p13 = scmp.lt.s32.totalorder %s1163_s10, %s1163_s10 }
  0x2f   : > { %p1166_p7 = pnand %p1164_p10, %p1102_p12 }
  0x30   : > { %p1173_p4 = por %p1172_p13, %p1171_p9 }
  0x31   : > { %p1167_p1 = pneg %p1166_p7 }
  0x32   : > { %1027 = dma.hbm_to_vmem [thread:$0]  (!%p1386_p11), %s1636_s3, 2048, %s237_s14, [#allocation6], %s1283_s18, %s1283_s18, %s1284_s19  }
  0x33   : > { %p1174_p2 = pnand %p1173_p4, %p1167_p1 }
  0x35   : > { %1177 = shalt.err (!%p1174_p2)
}
  0x36   : > { %1030 = dma.hbm_to_vmem [thread:$0]  (!%p1386_p11), %s1622_s5, 2048, %s253_s16, [#allocation9], %s1283_s18, %s1283_s18, %s1284_s19  }
  0x37   : > { %s1417_s14 = sadd.s32 1, %s1278_s27   ;;  %s32_s12 = sadd.s32 1, %s1274_s26 }
  0x38   : > { %s29_s15 = ssub.s32 %s1278_s27, %s1417_s14  ;;  %p39_p6 = scmp.ne.s32.totalorder %s1274_s26, %s1270_s25 }
  0x39   : > { %p30_p4 = scmp.eq.s32.totalorder %s29_s15, 0  ;;  %p40_p12 = scmp.eq.s32.totalorder %s1278_s27, 0 }
  0x3a   : > { %p1042_p0 = scmp.lt.s32.totalorder %s1278_s27, 2  ;;  %p1637_p3 = scmp.eq.s32.totalorder %s1358_s28, 1 }
  0x3b   : > { %s1427_s17 = scalar_select %p30_p4, %s1274_s26, %s32_s12  }
  0x3c   : > { %p41_p5 = por %p40_p12, %p39_p6  ;;  %p1431_p10 = por %p1637_p3, %p39_p6 }
  0x3d   : > { %s269_s21 = sand.u32 1, %s1274_s26   ;;  %s836_s22 = sshll.u32 %s1278_s27, 7 }
  0x3e   : > { %s1638_s20 = scalar_select %p1431_p10, 1, 0 }
  0x3f   : > { %s835_s16 = sshll.u32 %s269_s21, 3  ;;  %s1440_s23 = scalar_lea.hbm %s1617_s0, %s836_s22 }
  0x40   : > { %s273_s29 = scalar_lea.vmem [#allocation2], %s835_s16  ;;  %p1442_p11 = pnand %p1042_p0, %p41_p5 }
  0x41   : > { %s280_s10 = sshll.u32 %s273_s29, 4  ;;  %s270_s13 = scalar_lea.sflag [#allocation3], %s269_s21  ;;  %s281_s10 = int_to_ptr.vmem [resolvable:$true] %s280_s10 }
  0x42   : > { %s1178_s15 = scalar_lea.hbm %s1440_s23, 128  ;;  %p1180_p1 = pneg %p1442_p11 }
  0x43   : > { %p1179_p7 = scmp.ne.s32.totalorder %s1440_s23, %s1178_s15  ;;  %s1183_s18 = scalar_lea.hbm %s1617_s0, 256 }
  0x44   : > { %p1184_p2 = scmp.lt.s32.totalorder %s1440_s23, %s1617_s0  ;;  %p1185_p4 = scmp.lt.s32.totalorder %s1183_s18, %s1178_s15 }
  0x45   : > { %p1181_p9 = pnand %p1180_p1, %p1179_p7 }
  0x46   : > { %p1186_p6 = por %p1185_p4, %p1184_p2 }
  0x47   : > { %p1182_p13 = pneg %p1181_p9 }
  0x49   : > { %p1187_p12 = pnand %p1186_p6, %p1182_p13 }
  0x4b   : > { %1190 = shalt.err (!%p1187_p12)
}
  0x4c   : > { %s1191_s29 = scalar_lea.vmem %s281_s10, 128  ;;  %s1285_s21 = smov [#allocation2]  }
  0x4d   : > { %p1192_p0 = scmp.ne.s32.totalorder %s281_s10, %s1191_s29  ;;  %s1196_s2 = sshll.u32 %s1285_s21, 4  ;;  %s1197_s2 = int_to_ptr.vmem [resolvable:$false] %s1196_s2 }
  0x4e   : > { %s1198_s3 = scalar_lea.vmem %s1197_s2, 256  ;;  %p1199_p7 = scmp.lt.s32.totalorder %s281_s10, %s1197_s2 }
  0x4f   : > { %p1194_p5 = pnand %p1192_p0, %p1180_p1  ;;  %p1200_p9 = scmp.lt.s32.totalorder %s1198_s3, %s1191_s29 }
  0x51   : > { %p1195_p3 = pneg %p1194_p5  ;;  %p1201_p10 = por %p1200_p9, %p1199_p7 }
  0x53   : > { %p1202_p8 = pnand %p1201_p10, %p1195_p3 }
  0x55   : > { %1205 = shalt.err (!%p1202_p8)
}
  0x56   : > { %1034 = dma.hbm_to_vmem [thread:$0]  (!%p1442_p11), %s1440_s23, 128, %s281_s10, %s270_s13  }
  0x57   : > { %p1640_p13 = scmp.ne.s32.totalorder %s1633_s9, 0 }
  0x58   : > { %s1463_s15 = sand.u32 (!%p1640_p13), 1, %s1270_s25   ;;  %p1641_p10 = scmp.ne.s32.totalorder (!%p1640_p13), %s1631_s30, 0 }
  0x59   : > { %289 = sbr.rel (%p1640_p13) target bundleno = 1779 (0x6f3), region = 48  ;;  %s838_s12 = sshll.u32 (!%p1640_p13), %s1463_s15, 3 }
  0x5a   : > { %s292_s2 = scalar_lea.sflag (!%p1640_p13), [#allocation3], %s1463_s15  ;;  %s295_s3 = scalar_lea.vmem (!%p1640_p13), [#allocation2], %s838_s12 }
  0x5e   : > { %1249 = dma.done.wait (%p1641_p10), %s292_s2, 128  }
  0x5f   : > { %1251 = vsyncadd (%p1641_p10), %s292_s2, 4294967168  ;;  %p1642_p8 = scmp.eq.s32.totalorder %s1358_s28, 0 }
  0x61   : > { %1253 = dma.done.wait (%p1642_p8), [#allocation6], 4096   ;;  %p1643_p11 = pmov %p1642_p8 }
  0x62   : > { %p1644_p1 = pmov %p1642_p8 }
  0x63   : > { %1255 = vsyncadd (%p1643_p11), [#allocation6], 4294963200 }
  0x64   : > { %1257 = dma.done.wait (%p1644_p1), [#allocation9], 2048   ;;  %p1645_p2 = pmov %p1644_p1 }
  0x65   : > { %v339_v0 = vld [vmem:[%s1618_s1] sm:$0x1]  ;;  %s1286_s10 = smov 1   ;;  %s1287_s30 = smov 127   ;;  %v340_v2 = vlaneseq  ;;  %v447_v32 = vld [vmem:[#allocation7 + $0x78] sm:$0xff]  ;;  %v1294_v34 = vmov 0.0  }
  0x66   : > { %1259 = vsyncadd (%p1645_p2), [#allocation9], 4294965248  ;;  %346 = vrot.lane.b32.xlu0 %v339_v0, %s1286_s10  ;;  %357 = vrot.lane.b32.xlu1 %v339_v0, %s1287_s30  ;;  %v1484_v1 = vld [vmem:[%s295_s3] sm:$0xff]  ;;  %s1288_s11 = smov 2   ;;  %s1289_s13 = smov 126   ;;  %v445_v38 = vld [vmem:[#allocation7 + $0x68] sm:$0xff] }
  0x67   : > { %v341_v3 = vshrl.u32 %v340_v2, 7  ;;  %s1290_s22 = smov 4   ;;  %s1291_s18 = smov 124   ;;  %v463_v33 = vld [vmem:[#allocation5 + $0x78] sm:$0xff]  ;;  %935 = vmatprep.subr.mxu1 %v1294_v34  ;;  %900 = vmatprep.subr.mxu0 %v1294_v34  ;;  %v446_v35 = vld [vmem:[#allocation7 + $0x70] sm:$0xff]  ;;  %v461_v39 = vld [vmem:[#allocation5 + $0x68] sm:$0xff] }
  0x68   : > { %s1292_s19 = smov 8   ;;  %s1293_s16 = smov 120   ;;  %v462_v36 = vld [vmem:[#allocation5 + $0x70] sm:$0xff]  ;;  %936 = vmatpush3.msra.mxu1 %v447_v32  ;;  %901 = vmatpush3.msra.mxu0 %v463_v33  ;;  %v444_v40 = vld [vmem:[#allocation7 + $0x60] sm:$0xff]  ;;  %v443_v44 = vld [vmem:[#allocation7 + $0x58] sm:$0xff]  ;;  %vm1295_vm6 = vmmov 0  }
  0x69   : > { %v1487_v4 = vsub.s32 0, %v341_v3  ;;  %937 = vmatprep.subr.mxu1 %v1294_v34  ;;  %902 = vmatprep.subr.mxu0 %v1294_v34  ;;  %v460_v41 = vld [vmem:[#allocation5 + $0x60] sm:$0xff]  ;;  %v459_v45 = vld [vmem:[#allocation5 + $0x58] sm:$0xff]  ;;  %v442_v47 = vld [vmem:[#allocation7 + $0x50] sm:$0xff]  ;;  %s846_s9 = sshll.u32 %s1358_s28, 7  ;;  %s337_s23 = scalar_lea.vmem [#allocation10], %s838_s12 }
  0x6a   : > { %344 = vrot.lane.b32.xlu0 %v1484_v1, %s1286_s10  ;;  %938 = vmatpush3.msra.mxu1 %v446_v35  ;;  %v458_v48 = vld [vmem:[#allocation5 + $0x50] sm:$0xff]  ;;  %v441_v49 = vld [vmem:[#allocation7 + $0x48] sm:$0xff]  ;;  %v440_v51 = vld [vmem:[#allocation7 + $0x40] sm:$0xff]  ;;  %s730_s10 = sshll.u32 %s337_s23, 4  ;;  %p1646_p6 = scmp.ne.s32.totalorder %s1638_s20, 0  ;;  %s731_s10 = int_to_ptr.vmem [resolvable:$true] %s730_s10 }
  0x6b   : > { %v1490_v6 = vrot.slane %v339_v0, %v1487_v4  ;;  %903 = vmatpush3.msra.mxu0 %v462_v36  ;;  %939 = vmatprep.subr.mxu1 %v1294_v34  ;;  %v457_v50 = vld [vmem:[#allocation5 + $0x48] sm:$0xff]  ;;  %v456_v52 = vld [vmem:[#allocation5 + $0x40] sm:$0xff]  ;;  %v439_v53 = vld [vmem:[#allocation7 + $0x38] sm:$0xff] }
  0x6c   : > { %904 = vmatprep.subr.mxu0 %v1294_v34  ;;  %940 = vmatpush3.msra.mxu1 %v445_v38  ;;  %v455_v54 = vld [vmem:[#allocation5 + $0x38] sm:$0xff]  ;;  %v438_v55 = vld [vmem:[#allocation7 + $0x30] sm:$0xff]  ;;  %v437_v57 = vld [vmem:[#allocation7 + $0x28] sm:$0xff] }
  0x6d   : > { %905 = vmatpush3.msra.mxu0 %v461_v39  ;;  %941 = vmatprep.subr.mxu1 %v1294_v34  ;;  %v454_v56 = vld [vmem:[#allocation5 + $0x30] sm:$0xff]  ;;  %v453_v58 = vld [vmem:[#allocation5 + $0x28] sm:$0xff]  ;;  %v436_v59 = vld [vmem:[#allocation7 + $0x20] sm:$0xff] }
  0x6e   : > { %368 = vrot.lane.b32.xlu0 %v339_v0, %s1288_s11  ;;  %906 = vmatprep.subr.mxu0 %v1294_v34  ;;  %v452_v60 = vld [vmem:[#allocation5 + $0x20] sm:$0xff]  ;;  %v435_v61 = vld [vmem:[#allocation7 + $0x18] sm:$0xff]  ;;  %v434_v63 = vld [vmem:[#allocation7 + $0x10] sm:$0xff] }
  0x6f   : > { %942 = vmatpush3.msra.mxu1 %v444_v40  ;;  %907 = vmatpush3.msra.mxu0 %v460_v41  ;;  %v451_v62 = vld [vmem:[#allocation5 + $0x18] sm:$0xff]  ;;  %v433_v2 = vld [vmem:[#allocation7 + $0x8] sm:$0xff]  ;;  %v613_v32 = vld [vmem:[#allocation8] sm:$0xff] }
  0x70   : > { %943 = vmatprep.subr.mxu1 %v1294_v34  ;;  %908 = vmatprep.subr.mxu0 %v1294_v34  ;;  %v449_v3 = vld [vmem:[#allocation5 + $0x8] sm:$0xff]  ;;  %v843_v35 = vld [vmem:[%s1621_s4] ss:$0 sm:$0xff] }
  0x71   : > { %944 = vmatpush3.msra.mxu1 %v443_v44  ;;  %909 = vmatpush3.msra.mxu0 %v459_v45  ;;  %v844_v40 = vld [vmem:[%s1623_s6] ss:$0 sm:$0xff] }
  0x72   : > { %379 = vrot.lane.b32.xlu0 %v339_v0, %s1289_s13  ;;  %945 = vmatprep.subr.mxu1 %v1294_v34 }
  0x73   : > { %946 = vmatpush3.msra.mxu1 %v442_v47  ;;  %910 = vmatprep.subr.mxu0 %v1294_v34 }
  0x74   : > { %947 = vmatprep.subr.mxu1 %v1294_v34  ;;  %911 = vmatpush3.msra.mxu0 %v458_v48 }
  0x75   : > { %948 = vmatpush3.msra.mxu1 %v441_v49  ;;  %912 = vmatprep.subr.mxu0 %v1294_v34 }
  0x76   : > { %390 = vrot.lane.b32.xlu0 %v339_v0, %s1290_s22  ;;  %949 = vmatprep.subr.mxu1 %v1294_v34 }
  0x77   : > { %913 = vmatpush3.msra.mxu0 %v457_v50  ;;  %950 = vmatpush3.msra.mxu1 %v440_v51 }
  0x78   : > { %914 = vmatprep.subr.mxu0 %v1294_v34  ;;  %951 = vmatprep.subr.mxu1 %v1294_v34 }
  0x79   : > { %915 = vmatpush3.msra.mxu0 %v456_v52  ;;  %952 = vmatpush3.msra.mxu1 %v439_v53 }
  0x7a   : > { %401 = vrot.lane.b32.xlu0 %v339_v0, %s1291_s18  ;;  %916 = vmatprep.subr.mxu0 %v1294_v34 }
  0x7b   : > { %953 = vmatprep.subr.mxu1 %v1294_v34  ;;  %917 = vmatpush3.msra.mxu0 %v455_v54 }
  0x7c   : > { %954 = vmatpush3.msra.mxu1 %v438_v55  ;;  %918 = vmatprep.subr.mxu0 %v1294_v34 }
  0x7d   : > { %955 = vmatprep.subr.mxu1 %v1294_v34  ;;  %919 = vmatpush3.msra.mxu0 %v454_v56 }
  0x7e   : > { %412 = vrot.lane.b32.xlu0 %v339_v0, %s1292_s19  ;;  %956 = vmatpush3.msra.mxu1 %v437_v57 }
  0x7f   : > { %920 = vmatprep.subr.mxu0 %v1294_v34  ;;  %957 = vmatprep.subr.mxu1 %v1294_v34 }
  0x80   : > { %921 = vmatpush3.msra.mxu0 %v453_v58  ;;  %958 = vmatpush3.msra.mxu1 %v436_v59 }
  0x81   : > { %922 = vmatprep.subr.mxu0 %v1294_v34  ;;  %959 = vmatprep.subr.mxu1 %v1294_v34 }
  0x82   : > { %423 = vrot.lane.b32.xlu0 %v339_v0, %s1293_s16  ;;  %923 = vmatpush3.msra.mxu0 %v452_v60  ;;  %v450_v0 = vld [vmem:[#allocation5 + $0x10] sm:$0xff] }
  0x83   : > { %960 = vmatpush3.msra.mxu1 %v435_v61  ;;  %924 = vmatprep.subr.mxu0 %v1294_v34 }
  0x84   : > { %961 = vmatprep.subr.mxu1 %v1294_v34  ;;  %925 = vmatpush3.msra.mxu0 %v451_v62 }
  0x85   : > { %962 = vmatpush3.msra.mxu1 %v434_v63  ;;  %926 = vmatprep.subr.mxu0 %v1294_v34 }
  0x86   : > { %963 = vmatprep.subr.mxu1 %v1294_v34  ;;  %927 = vmatpush3.msra.mxu0 %v450_v0 }
  0x87   : > { %964 = vmatpush3.msra.mxu1 %v433_v2  ;;  %928 = vmatprep.subr.mxu0 %v1294_v34 }
  0x88   : > { %965 = vmatprep.subr.mxu1 %v1294_v34  ;;  %929 = vmatpush3.msra.mxu0 %v449_v3 }
  0x89   : > { %967 = vmatprep.mubr.msk.f32.mxu1 %vm1295_vm6, %v1294_v34  ;;  %930 = vmatprep.subr.mxu0 %v1294_v34 }
  0x8a   : > { %932 = vmatprep.mubr.msk.f32.mxu0 %vm1295_vm6, %v1294_v34 }
  0xd8   : > { %v347_v5 = vpop.permute.xlu0 %346  ;;  %v358_v11 = vpop.permute.xlu1 %357 }
  0xd9   : > { %v351_v7 = vrot.slane %v347_v5, %v1487_v4  ;;  %v362_v12 = vrot.slane %v358_v11, %v1487_v4  ;;  %v432_v5 = vld [vmem:[#allocation7] sm:$0xff] }
  0xda   : > { %966 = vmatpush3.msra.mxu1 %v432_v5 }
  0xdb   : > { %vm352_vm0 = vcmp.eq.s32.totalorder %v351_v7, %v1490_v6  ;;  %vm363_vm1 = vcmp.eq.s32.totalorder %v362_v12, %v1490_v6  ;;  %v448_v7 = vld [vmem:[#allocation5] sm:$0xff]  ;;  %968 = vmatmul.mubr.f32.vlgmr.msra.gmra.mxu1 %v1484_v1 }
  0xdc   : > { %v345_v8 = vpop.permute.xlu0 %344  ;;  %931 = vmatpush3.msra.mxu0 %v448_v7 }
  0xdd   : > { %v353_v9 = vmax.f32 %v1484_v1, %v345_v8  ;;  %970 = vmatprep.subr.mxu0 %v1294_v34 }
  0xdf   : > { %v354_v10 = vsel %vm352_vm0, %v353_v9, %v1484_v1 }
  0xe0   : > { %355 = vrot.lane.b32.xlu1 %v354_v10, %s1287_s30  ;;  %v369_v16 = vpop.permute.xlu0 %368 }
  0xe1   : > { %v373_v17 = vrot.slane %v369_v16, %v1487_v4  ;;  %v628_v16 = vld [vmem:[#allocation8 + $0x78] sm:$0xff] }
  0xe3   : > { %vm374_vm2 = vcmp.eq.s32.totalorder %v373_v17, %v1490_v6 }
  0xe4   : > { %v380_v21 = vpop.permute.xlu0 %379 }
  0xe5   : > { %v384_v22 = vrot.slane %v380_v21, %v1487_v4 }
  0xe7   : > { %vm385_vm3 = vcmp.eq.s32.totalorder %v384_v22, %v1490_v6  ;;  %v622_v22 = vld [vmem:[#allocation8 + $0x48] sm:$0xff] }
  0xe8   : > { %v391_v26 = vpop.permute.xlu0 %390 }
  0xe9   : > { %v395_v27 = vrot.slane %v391_v26, %v1487_v4  ;;  %v619_v26 = vld [vmem:[#allocation8 + $0x30] sm:$0xff] }
  0xeb   : > { %vm396_vm4 = vcmp.eq.s32.totalorder %v395_v27, %v1490_v6  ;;  %v618_v27 = vld [vmem:[#allocation8 + $0x28] sm:$0xff] }
  0xec   : > { %v402_v31 = vpop.permute.xlu0 %401 }
  0xed   : > { %v406_v37 = vrot.slane %v402_v31, %v1487_v4  ;;  %v614_v31 = vld [vmem:[#allocation8 + $0x8] sm:$0xff] }
  0xef   : > { %vm407_vm5 = vcmp.eq.s32.totalorder %v406_v37, %v1490_v6 }
  0xf0   : > { %v413_v8 = vpop.permute.xlu0 %412 }
  0xf1   : > { %v417_v9 = vrot.slane %v413_v8, %v1487_v4 }
  0xf3   : > { %vm418_vm7 = vcmp.eq.s32.totalorder %v417_v9, %v1490_v6 }
 0x152   : > { %v356_v13 = vpop.permute.xlu1 %355 }
 0x153   : > { %v364_v14 = vmax.f32 %v354_v10, %v356_v13  ;;  %v424_v13 = vpop.permute.xlu0 %423 }
 0x154   : > { %v428_v1 = vrot.slane %v424_v13, %v1487_v4  ;;  %v624_v4 = vld [vmem:[#allocation8 + $0x58] sm:$0xff] }
 0x155   : > { %v365_v15 = vsel %vm363_vm1, %v364_v14, %v354_v10 }
 0x156   : > { %366 = vrot.lane.b32.xlu1 %v365_v15, %s1288_s11  ;;  %vm429_vm8 = vcmp.eq.s32.totalorder %v428_v1, %v1490_v6  ;;  %v623_v6 = vld [vmem:[#allocation8 + $0x50] sm:$0xff] }
 0x19b   : > { %v600_v21 = vpop.f32.mrf.mxu1 }
 0x1c8   : > { %v367_v18 = vpop.permute.xlu1 %366 }
 0x1c9   : > { %v375_v19 = vmax.f32 %v365_v15, %v367_v18  ;;  %v627_v18 = vld [vmem:[#allocation8 + $0x70] sm:$0xff] }
 0x1cb   : > { %v376_v20 = vsel %vm374_vm2, %v375_v19, %v365_v15  ;;  %v626_v19 = vld [vmem:[#allocation8 + $0x68] sm:$0xff] }
 0x1cc   : > { %377 = vrot.lane.b32.xlu1 %v376_v20, %s1289_s13  ;;  %s728_s13 = scalar_lea.hbm %s1624_s7, %s846_s9 }
 0x23e   : > { %v378_v23 = vpop.permute.xlu1 %377 }
 0x23f   : > { %v386_v24 = vmax.f32 %v376_v20, %v378_v23  ;;  %v969_v23 = vpop.f32.mrf.mxu1 }
 0x241   : > { %v387_v25 = vsel %vm385_vm3, %v386_v24, %v376_v20  ;;  %v625_v20 = vld [vmem:[#allocation8 + $0x60] sm:$0xff] }
 0x242   : > { %388 = vrot.lane.b32.xlu1 %v387_v25, %s1290_s22  ;;  %v621_v24 = vld [vmem:[#allocation8 + $0x40] sm:$0xff]  ;;  %s717_s22 = scalar_lea.sflag [#allocation4], %s1463_s15 }
 0x2b4   : > { %v389_v28 = vpop.permute.xlu1 %388 }
 0x2b5   : > { %v397_v29 = vmax.f32 %v387_v25, %v389_v28  ;;  %v617_v28 = vld [vmem:[#allocation8 + $0x20] sm:$0xff] }
 0x2b7   : > { %v398_v30 = vsel %vm396_vm4, %v397_v29, %v387_v25  ;;  %v620_v25 = vld [vmem:[#allocation8 + $0x38] sm:$0xff] }
 0x2b8   : > { %399 = vrot.lane.b32.xlu1 %v398_v30, %s1291_s18  ;;  %v616_v29 = vld [vmem:[#allocation8 + $0x18] sm:$0xff]  ;;  %s1206_s18 = scalar_lea.vmem %s731_s10, 128 }
 0x2b9   : > { %p1207_p4 = scmp.ne.s32.totalorder %s731_s10, %s1206_s18 }
 0x2bb   : > { %p1208_p12 = pnand %p1207_p4, %p1646_p6 }
 0x2bd   : > { %p1209_p0 = pneg %p1208_p12 }
 0x32a   : > { %v400_v42 = vpop.permute.xlu1 %399 }
 0x32b   : > { %v408_v43 = vmax.f32 %v398_v30, %v400_v42 }
 0x32d   : > { %v1516_v46 = vsel %vm407_vm5, %v408_v43, %v398_v30  ;;  %v615_v30 = vld [vmem:[#allocation8 + $0x10] sm:$0xff] }
 0x32e   : > { %410 = vrot.lane.b32.xlu1 %v1516_v46, %s1292_s19  ;;  %s1296_s19 = smov [#allocation10]  }
 0x3a0   : > { %v411_v10 = vpop.permute.xlu1 %410 }
 0x3a1   : > { %v419_v11 = vmax.f32 %v1516_v46, %v411_v10 }
 0x3a3   : > { %v420_v12 = vsel %vm418_vm7, %v419_v11, %v1516_v46 }
 0x3a4   : > { %421 = vrot.lane.b32.xlu1 %v420_v12, %s1293_s16  ;;  %s1210_s16 = sshll.u32 %s1296_s19, 4  ;;  %s1211_s16 = int_to_ptr.vmem [resolvable:$false] %s1210_s16 }
 0x3a5   : > { %s1212_s28 = scalar_lea.vmem %s1211_s16, 256  ;;  %p1213_p5 = scmp.lt.s32.totalorder %s731_s10, %s1211_s16 }
 0x3a6   : > { %p1214_p3 = scmp.lt.s32.totalorder %s1212_s28, %s1206_s18 }
 0x3a8   : > { %p1215_p7 = por %p1214_p3, %p1213_p5 }
 0x3aa   : > { %p1216_p9 = pnand %p1215_p7, %p1209_p0 }
 0x416   : > { %v422_v14 = vpop.permute.xlu1 %421 }
 0x417   : > { %v430_v15 = vmax.f32 %v420_v12, %v422_v14 }
 0x419   : > { %v431_v17 = vsel %vm429_vm8, %v430_v15, %v420_v12 }
 0x41a   : > { %933 = vmatmul.mubr.f32.vlgmr.msra.gmra.mxu0 %v431_v17 }
 0x41b   : > { %971 = vmatpush3.msra.mxu0 %v628_v16  ;;  %1002 = vmatprep.mubr.msk.f32.mxu0 %vm1295_vm6, %v1294_v34 }
 0x41c   : > { %972 = vmatprep.subr.mxu0 %v1294_v34 }
 0x41d   : > { %973 = vmatpush3.msra.mxu0 %v627_v18 }
 0x41e   : > { %974 = vmatprep.subr.mxu0 %v1294_v34 }
 0x41f   : > { %975 = vmatpush3.msra.mxu0 %v626_v19 }
 0x420   : > { %976 = vmatprep.subr.mxu0 %v1294_v34 }
 0x421   : > { %977 = vmatpush3.msra.mxu0 %v625_v20 }
 0x422   : > { %978 = vmatprep.subr.mxu0 %v1294_v34 }
 0x423   : > { %979 = vmatpush3.msra.mxu0 %v624_v4 }
 0x424   : > { %980 = vmatprep.subr.mxu0 %v1294_v34 }
 0x425   : > { %981 = vmatpush3.msra.mxu0 %v623_v6 }
 0x426   : > { %982 = vmatprep.subr.mxu0 %v1294_v34 }
 0x427   : > { %983 = vmatpush3.msra.mxu0 %v622_v22 }
 0x428   : > { %984 = vmatprep.subr.mxu0 %v1294_v34 }
 0x429   : > { %985 = vmatpush3.msra.mxu0 %v621_v24 }
 0x42a   : > { %986 = vmatprep.subr.mxu0 %v1294_v34 }
 0x42b   : > { %987 = vmatpush3.msra.mxu0 %v620_v25 }
 0x42c   : > { %988 = vmatprep.subr.mxu0 %v1294_v34 }
 0x42d   : > { %989 = vmatpush3.msra.mxu0 %v619_v26 }
 0x42e   : > { %990 = vmatprep.subr.mxu0 %v1294_v34 }
 0x42f   : > { %991 = vmatpush3.msra.mxu0 %v618_v27 }
 0x430   : > { %992 = vmatprep.subr.mxu0 %v1294_v34 }
 0x431   : > { %993 = vmatpush3.msra.mxu0 %v617_v28 }
 0x432   : > { %994 = vmatprep.subr.mxu0 %v1294_v34 }
 0x433   : > { %995 = vmatpush3.msra.mxu0 %v616_v29 }
 0x434   : > { %996 = vmatprep.subr.mxu0 %v1294_v34 }
 0x435   : > { %997 = vmatpush3.msra.mxu0 %v615_v30 }
 0x436   : > { %998 = vmatprep.subr.mxu0 %v1294_v34 }
 0x437   : > { %999 = vmatpush3.msra.mxu0 %v614_v31 }
 0x438   : > { %1000 = vmatprep.subr.mxu0 %v1294_v34 }
 0x439   : > { %1001 = vmatpush3.msra.mxu0 %v613_v32 }
 0x4da   : > { %v530_v33 = vpop.f32.mrf.mxu0 }
 0x4db   : > { %v601_v36 = vadd.f32 %v600_v21, %v530_v33 }
 0x4dc   : > { %v934_v37 = vpop.f32.mrf.mxu0 }
 0x4dd   : > { %v611_v38 = vadd.f32 %v843_v35, %v601_v36 }
 0x4df   : > { %1094 = vtanh.f32 %v611_v38 }
 0x4ec   : > { %v1095_v39 = vpop.eup %1094 }
 0x4ed   : > { %1003 = vmatmul.mubr.f32.vlgmr.msra.gmra.mxu0 %v1095_v39 }
 0x5ad   : > { %v702_v41 = vpop.f32.mrf.mxu0 }
 0x5ae   : > { %v703_v34 = vadd.f32 %v844_v40, %v702_v41 }
 0x5af   : > { %v1004_v42 = vpop.f32.mrf.mxu0 }
 0x5b0   : > { %706 = vmax.xlane.f32.xlu0 %v703_v34 }
 0x639   : > { %v707_v43 = vpop.xlane.xlu0 %706 }
 0x63a   : > { %v708_v44 = vsub.f32 %v703_v34, %v707_v43 }
 0x63c   : > { %v709_v45 = vmul.f32 1.442695, %v708_v44 }
 0x63e   : > { %1096 = vpow2.f32 %v709_v45 }
 0x64b   : > { %v1097_v46 = vpop.eup %1096 }
 0x64c   : > { %711 = vadd.xlane.f32.xlu1 %v1097_v46 }
 0x6d5   : > { %v712_v47 = vpop.xlane.xlu1 %711 }
 0x6d6   : > { %1098 = vrcp.f32 %v712_v47 }
 0x6e3   : > { %v1099_v48 = vpop.eup %1098 }
 0x6e4   : > { %v714_v49 = vmul.f32 %v1099_v48, %v1097_v46 }
 0x6e6   : > { %715 = vst [vmem:[%s337_s23] sm:$0xff] %v714_v49 }
 0x6e7   : > { %1219 = shalt.err (!%p1216_p9)
}
 0x6e8   : > { %s1220_s12 = scalar_lea.hbm %s728_s13, 128  ;;  %s1224_s21 = scalar_lea.hbm %s1624_s7, 256 }
 0x6e9   : > { %p1221_p13 = scmp.ne.s32.totalorder %s728_s13, %s1220_s12  ;;  %p1225_p11 = scmp.lt.s32.totalorder %s728_s13, %s1624_s7 }
 0x6ea   : > { %p1226_p1 = scmp.lt.s32.totalorder %s1224_s21, %s1220_s12 }
 0x6eb   : > { %p1222_p10 = pnand %p1221_p13, %p1646_p6 }
 0x6ec   : > { %p1227_p2 = por %p1226_p1, %p1225_p11 }
 0x6ed   : > { %p1223_p8 = pneg %p1222_p10 }
 0x6ef   : > { %p1228_p4 = pnand %p1227_p2, %p1223_p8 }
 0x6f1   : > { %1231 = shalt.err (!%p1228_p4)
}
 0x6f2   : > { %1019 = dma.vmem_to_hbm [thread:$0]  (%p1646_p6), %s731_s10, 128, %s728_s13, %s717_s22  }
 0x6f3 PF: > { %s742_s9 = sand.u32 1, %s1266_s24   ;;  %p1647_p12 = scmp.ne.s32.totalorder %s1632_s8, 0 }
 0x6f4   : > { %p1648_p0 = scmp.ge.s32.totalorder %s1278_s27, 2  ;;  %s743_s23 = scalar_lea.sflag [#allocation4], %s742_s9 }
 0x6f6   : > { %p1036_p5 = pnand %p1648_p0, %p1647_p12 }
 0x6f8   : > { %p1037_p3 = pneg %p1036_p5 }
 0x6fa   : > { %1261 = dma.done.wait (%p1037_p3), %s743_s23, 128  }
 0x6fb   : > { %1263 = vsyncadd (%p1037_p3), %s743_s23, 4294967168  ;;  %p22_p7 = scmp.ge.s32.totalorder %s1417_s14, 4   ;;  %s1649_s24 = smov %s1270_s25 }
 0x6fc   : > { %s1650_s25 = smov %s1274_s26  ;;  %s1651_s26 = smov %s1427_s17 }
 0x6fd   : > { %s1652_s27 = smov %s1417_s14  ;;  %24 = sbr.rel (!%p22_p7) target bundleno = 10 (0xa), region = 105 }
 0x702   :  { %748 = vsyncpa [#allocation3], 1 }
 0x703   :  { %750 = vsyncpa [#allocation3 + $0x1], 1 }
 0x704   :  { %751 = vsyncpa [#allocation6], 1 }
 0x705   :  { %752 = vsyncpa [#allocation9], 1 }
 0x706   :  { %753 = vsyncpa [#allocation4], 1 }
 0x707   :  { %755 = vsyncpa [#allocation4 + $0x1], 1 }

</bundles_post_ra>
